<compile_context>
chip_gen: v7x
topology: tpu7x:2x2x1
jax: 0.10.0
libtpu: 0.0.40
codegen_flags: <defaults>
</compile_context>

<pallas_src>
import functools

import jax
import jax.numpy as jnp
from jax.experimental import pallas as pl
from jax.experimental.pallas import tpu as pltpu


_VMEM_BUDGET_BYTES = 40 * 1024 * 1024   # conservative: headroom on v7x (64 MiB/TC)
_TARGET_TILE_BYTES = 4 * 1024 * 1024    # >=1 MiB tiles reach ~85%+ of HBM roofline
_MAX_TILE_ROWS = 2048


def _round_up(x, m):
    return ((x + m - 1) // m) * m


def _char_sums_kernel(feat_ref, tT_ref, cos_out_ref, sin_out_ref,
                      cos_acc, sin_acc, *, n_rows, f_sub):
    """Accumulates sum_b cos(t @ x_b) and sum_b sin(t @ x_b) over the batch."""
    i = pl.program_id(0)
    tb = feat_ref.shape[0]

    @pl.when(i == 0)
    def _init():
        cos_acc[...] = jnp.zeros_like(cos_acc)
        sin_acc[...] = jnp.zeros_like(sin_acc)

    # [TB, D] @ [D, F_pad] on the MXU; output is lane-dense (F_pad = 128 lanes).
    tx = jnp.dot(feat_ref[...], tT_ref[...], preferred_element_type=jnp.float32)

    # Move the tiny frequency axis onto sublanes (XLU transpose, otherwise-idle
    # slot) so the expensive cos/sin only touch f_sub*TB elements, not 128*TB.
    tx_f = tx.T[:f_sub, :]                     # [f_sub, TB]
    cos_v = jnp.cos(tx_f)
    sin_v = jnp.sin(tx_f)

    start = i * tb

    @pl.when(start + tb <= n_rows)             # interior tile: unmasked fast path
    def _full_tile():
        cos_acc[...] += cos_v
        sin_acc[...] += sin_v

    @pl.when(start + tb > n_rows)              # edge tile: mask rows past the batch
    def _edge_tile():
        col = jax.lax.broadcasted_iota(jnp.int32, (1, tb), 1) + start
        valid = col < n_rows
        cos_acc[...] += jnp.where(valid, cos_v, 0.0)
        sin_acc[...] += jnp.where(valid, sin_v, 0.0)

    @pl.when(i == pl.num_programs(0) - 1)
    def _finalize():
        cos_out_ref[...] = jnp.sum(cos_acc[...], axis=1, keepdims=True)
        sin_out_ref[...] = jnp.sum(sin_acc[...], axis=1, keepdims=True)


def _pick_tile_rows(batch, d, f_pad, f_sub, requested=None):
    """Row-tile size: big enough to amortize per-step overhead, fits VMEM budget."""
    b8 = _round_up(max(int(batch), 1), 8)
    if requested is not None:
        tb = int(requested)
    else:
        tb = max(128, _TARGET_TILE_BYTES // (4 * d))
    # Bytes of VMEM per tile row: double-buffered feature rows + f32 matmul
    # output / transpose / trig temporaries + two accumulator rows.
    per_row = 8 * d + 24 * f_pad + 8 * f_sub + 64
    fixed = 8 * d * f_pad + (2 << 20)          # resident t^T (2 bufs) + margin
    tb_vmem = max(8, (_VMEM_BUDGET_BYTES - fixed) // per_row)
    tb = min(tb, tb_vmem, _MAX_TILE_ROWS, b8)
    return max(8, (tb // 8) * 8)


def _char_sums(feat, tT, f_sub, *, block_b=None):
    """Per-frequency batch sums of cos/sin(feat @ tT).  Returns two [f_sub] vectors."""
    b, d = feat.shape
    f_pad = tT.shape[1]
    tb = _pick_tile_rows(b, d, f_pad, f_sub, requested=block_b)
    grid = (pl.cdiv(b, tb),)

    footprint = (2 * tb * d + 2 * d * f_pad + 2 * f_sub * tb + 6 * tb * f_pad) * 4
    vmem_limit = int(min(48 * 1024 * 1024,
                         max(32 * 1024 * 1024, footprint * 5 // 4)))

    kernel = functools.partial(_char_sums_kernel, n_rows=int(b), f_sub=int(f_sub))
    cost = pl.CostEstimate(
        flops=2 * b * d * f_pad + 4 * b * f_sub,
        transcendentals=2 * b * f_sub,
        bytes_accessed=(b * d + d * f_pad + 2 * f_sub) * 4,
    )

    cos_s, sin_s = pl.pallas_call(
        kernel,
        out_shape=(jax.ShapeDtypeStruct((f_sub, 1), jnp.float32),
                   jax.ShapeDtypeStruct((f_sub, 1), jnp.float32)),
        grid_spec=pltpu.PrefetchScalarGridSpec(
            num_scalar_prefetch=0,
            grid=grid,
            in_specs=[
                pl.BlockSpec((tb, d), lambda i: (i, 0)),      # streamed feature tiles
                pl.BlockSpec((d, f_pad), lambda i: (0, 0)),   # resident t^T (one DMA)
            ],
            out_specs=(pl.BlockSpec((f_sub, 1), lambda i: (0, 0)),
                       pl.BlockSpec((f_sub, 1), lambda i: (0, 0))),
            scratch_shapes=[pltpu.VMEM((f_sub, tb), jnp.float32),
                            pltpu.VMEM((f_sub, tb), jnp.float32)],
        ),
        compiler_params=pltpu.CompilerParams(
            dimension_semantics=("arbitrary",),
            vmem_limit_bytes=vmem_limit,
        ),
        cost_estimate=cost,
    )(feat, tT)
    return cos_s[:, 0], sin_s[:, 0]


def cf_loss(feat_tg, feat, t=None, *, num_freqs=8, alpha=0.5, beta=0.5,
            key=None, block_b=None):
    """Pallas implementation of CFLossFunc.forward.  Returns a scalar f32."""
    feat_tg = jnp.asarray(feat_tg, jnp.float32)
    feat = jnp.asarray(feat, jnp.float32)
    b_tg, d = feat_tg.shape
    b_x = feat.shape[0]

    if t is None:
        # TODO(synk): PyTorch draws t ~ N(0,1) from the global device RNG; here an
        # explicit JAX key keeps the script deterministic.
        if key is None:
            key = jax.random.PRNGKey(0)
        t = jax.random.normal(key, (num_freqs, d), dtype=jnp.float32)
    t = jnp.asarray(t, jnp.float32)
    f = t.shape[0]
    f_pad = _round_up(f, 128)         # lane-dense MXU output
    f_sub = _round_up(f, 8)           # sublane-packed trig / accumulators

    # Only the tiny t is transposed / zero-padded; the big feature matrices are
    # streamed from HBM exactly as given (no concat / pad copies).
    tT = jnp.pad(t.T, ((0, 0), (0, f_pad - f)))                  # [D, F_pad]

    tg_cos, tg_sin = _char_sums(feat_tg, tT, f_sub, block_b=block_b)
    x_cos, x_sin = _char_sums(feat, tT, f_sub, block_b=block_b)

    # Tiny O(F) epilogue in plain JAX (mirrors the PyTorch module).
    tg_real = tg_cos[:f] / b_tg
    tg_imag = tg_sin[:f] / b_tg
    x_real = x_cos[:f] / b_x
    x_imag = x_sin[:f] / b_x
    tg_norm = jnp.sqrt(tg_real * tg_real + tg_imag * tg_imag)
    x_norm = jnp.sqrt(x_real * x_real + x_imag * x_imag)
    amp_diff = tg_norm - x_norm
    loss_amp = amp_diff * amp_diff
    loss_pha = 2.0 * (tg_norm * x_norm - x_real * tg_real - x_imag * tg_imag)
    loss_pha = jnp.maximum(loss_pha, 1e-12)
    return jnp.mean(jnp.sqrt(alpha * loss_amp + beta * loss_pha))


def _reference(feat_tg, feat, t, alpha=0.5, beta=0.5):
    """Pure-JAX reference mirroring the PyTorch code (sanity check)."""
    tx = t @ feat.T
    tt = t @ feat_tg.T
    x_r, x_i = jnp.mean(jnp.cos(tx), 1), jnp.mean(jnp.sin(tx), 1)
    g_r, g_i = jnp.mean(jnp.cos(tt), 1), jnp.mean(jnp.sin(tt), 1)
    x_n = jnp.sqrt(x_r * x_r + x_i * x_i)
    g_n = jnp.sqrt(g_r * g_r + g_i * g_i)
    amp = (g_n - x_n) ** 2
    pha = jnp.maximum(2.0 * (g_n * x_n - x_r * g_r - x_i * g_i), 1e-12)
    return jnp.mean(jnp.sqrt(alpha * amp + beta * pha))


if __name__ == "__main__":
    key = jax.random.PRNGKey(0)
    k_tg, k_x, k_t = jax.random.split(key, 3)

    # Small shapes consistent with the module: feat_tg [B1,D], feat [B2,D], t [F,D].
    B1, B2, D, F = 4, 2, 32, 8
    feat_tg = jax.random.normal(k_tg, (B1, D), dtype=jnp.float32)
    feat = jax.random.normal(k_x, (B2, D), dtype=jnp.float32)
    t = jax.random.normal(k_t, (F, D), dtype=jnp.float32)

    loss = cf_loss(feat_tg, feat, t, alpha=0.5, beta=0.5)
    loss = jax.block_until_ready(loss)
    ref = _reference(feat_tg, feat, t, alpha=0.5, beta=0.5)
    assert jnp.allclose(loss, ref, atol=1e-5, rtol=1e-5), (loss, ref)

    # Larger, non-tile-aligned shapes exercise the multi-tile grid and the
    # masked edge tiles of both sources (no HBM padding / concat anywhere).
    k1, k2, k3 = jax.random.split(jax.random.PRNGKey(1), 3)
    B1b, B2b, Db, Fb = 300, 180, 256, 16
    ftg = jax.random.normal(k1, (B1b, Db), dtype=jnp.float32)
    fx = jax.random.normal(k2, (B2b, Db), dtype=jnp.float32)
    t2 = jax.random.normal(k3, (Fb, Db), dtype=jnp.float32)
    loss2 = cf_loss(ftg, fx, t2, alpha=0.3, beta=0.7, block_b=128)
    loss2 = jax.block_until_ready(loss2)
    ref2 = _reference(ftg, fx, t2, alpha=0.3, beta=0.7)
    assert jnp.allclose(loss2, ref2, atol=1e-4, rtol=1e-4), (loss2, ref2)

    print("KERNEL_OK")
</pallas_src>

<mosaic_0001>
module attributes {stable_mosaic.version = 11 : i64} {
  func.func @_char_sums_kernel(%arg0: i32, %arg1: memref<8x32xf32, #tpu.memory_space<vmem>>, %arg2: memref<32x128xf32, #tpu.memory_space<vmem>>, %arg3: memref<8x1xf32, #tpu.memory_space<vmem>>, %arg4: memref<8x1xf32, #tpu.memory_space<vmem>>, %arg5: memref<8x8xf32, #tpu.memory_space<vmem>>, %arg6: memref<8x8xf32, #tpu.memory_space<vmem>>) attributes {dimension_semantics = [#tpu.dimension_semantics<arbitrary>], iteration_bounds = array<i64: 1>, scalar_prefetch = 0 : i64, scratch_operands = 2 : i64, tpu.core_type = #tpu.core_type<tc>, window_params = [{transform_indices = @transform_0, window_bounds = array<i64: 8, 32>}, {pipeline_mode = #tpu.pipeline_mode<synchronous>, transform_indices = @transform_1, window_bounds = array<i64: 32, 128>}, {pipeline_mode = #tpu.pipeline_mode<synchronous>, transform_indices = @transform_2, window_bounds = array<i64: 8, 1>}, {pipeline_mode = #tpu.pipeline_mode<synchronous>, transform_indices = @transform_3, window_bounds = array<i64: 8, 1>}]} {
    %c0_i32 = arith.constant 0 : i32
    %0 = arith.cmpi eq, %arg0, %c0_i32 : i32
    %1 = arith.extui %0 : i1 to i32
    %c0_i32_0 = arith.constant 0 : i32
    %2 = arith.cmpi ne, %1, %c0_i32_0 : i32
    scf.if %2 {
      %cst_11 = arith.constant 0.000000e+00 : f32
      %22 = vector.broadcast %cst_11 : f32 to vector<8x8xf32>
      %c0_12 = arith.constant 0 : index
      %c0_13 = arith.constant 0 : index
      %23 = vector.load %arg5[%c0_12, %c0_13] : memref<8x8xf32, #tpu.memory_space<vmem>>, vector<8x8xf32>
      tpu.vector_store %arg5[%c0_12, %c0_13], %22 {strides = array<i32>} : memref<8x8xf32, #tpu.memory_space<vmem>>, vector<8x8xf32>,
      %cst_14 = arith.constant 0.000000e+00 : f32
      %24 = vector.broadcast %cst_14 : f32 to vector<8x8xf32>
      %c0_15 = arith.constant 0 : index
      %c0_16 = arith.constant 0 : index
      %25 = vector.load %arg6[%c0_15, %c0_16] : memref<8x8xf32, #tpu.memory_space<vmem>>, vector<8x8xf32>
      tpu.vector_store %arg6[%c0_15, %c0_16], %24 {strides = array<i32>} : memref<8x8xf32, #tpu.memory_space<vmem>>, vector<8x8xf32>,
    } else {
    }
    %c0 = arith.constant 0 : index
    %c0_1 = arith.constant 0 : index
    %3 = vector.load %arg1[%c0, %c0_1] : memref<8x32xf32, #tpu.memory_space<vmem>>, vector<8x32xf32>
    %c0_2 = arith.constant 0 : index
    %c0_3 = arith.constant 0 : index
    %4 = vector.load %arg2[%c0_2, %c0_3] : memref<32x128xf32, #tpu.memory_space<vmem>>, vector<32x128xf32>
    %cst = arith.constant dense<0.000000e+00> : vector<8x128xf32>
    %5 = tpu.matmul %3, %4, %cst {dimension_numbers = #tpu.dot_dimension_numbers<[1], [0], [0], [1], [0, 0, 1, 1], [], []>} : vector<8x32xf32>, vector<32x128xf32>, vector<8x128xf32> -> vector<8x128xf32>
    %6 = tpu.transpose %5, [1, 0] : vector<8x128xf32> -> vector<128x8xf32>
    %7 = vector.extract_strided_slice %6 {offsets = [0, 0], sizes = [8, 8], strides = [1, 1]} : vector<128x8xf32> to vector<8x8xf32>
    %8 = math.cos %7 : vector<8x8xf32>
    %9 = math.sin %7 : vector<8x8xf32>
    %c8_i32 = arith.constant 8 : i32
    %10 = arith.muli %arg0, %c8_i32 : i32
    %c8_i32_4 = arith.constant 8 : i32
    %11 = arith.addi %10, %c8_i32_4 : i32
    %c4_i32 = arith.constant 4 : i32
    %12 = arith.cmpi sle, %11, %c4_i32 : i32
    %13 = arith.extui %12 : i1 to i32
    %c0_i32_5 = arith.constant 0 : i32
    %14 = arith.cmpi ne, %13, %c0_i32_5 : i32
    scf.if %14 {
      %c0_11 = arith.constant 0 : index
      %c0_12 = arith.constant 0 : index
      %22 = vector.load %arg5[%c0_11, %c0_12] : memref<8x8xf32, #tpu.memory_space<vmem>>, vector<8x8xf32>
      %23 = arith.addf %22, %8 : vector<8x8xf32>
      %c0_13 = arith.constant 0 : index
      %c0_14 = arith.constant 0 : index
      %24 = vector.load %arg5[%c0_13, %c0_14] : memref<8x8xf32, #tpu.memory_space<vmem>>, vector<8x8xf32>
      tpu.vector_store %arg5[%c0_13, %c0_14], %23 {strides = array<i32>} : memref<8x8xf32, #tpu.memory_space<vmem>>, vector<8x8xf32>,
      %c0_15 = arith.constant 0 : index
      %c0_16 = arith.constant 0 : index
      %25 = vector.load %arg6[%c0_15, %c0_16] : memref<8x8xf32, #tpu.memory_space<vmem>>, vector<8x8xf32>
      %26 = arith.addf %25, %9 : vector<8x8xf32>
      %c0_17 = arith.constant 0 : index
      %c0_18 = arith.constant 0 : index
      %27 = vector.load %arg6[%c0_17, %c0_18] : memref<8x8xf32, #tpu.memory_space<vmem>>, vector<8x8xf32>
      tpu.vector_store %arg6[%c0_17, %c0_18], %26 {strides = array<i32>} : memref<8x8xf32, #tpu.memory_space<vmem>>, vector<8x8xf32>,
    } else {
    }
    %c8_i32_6 = arith.constant 8 : i32
    %15 = arith.addi %10, %c8_i32_6 : i32
    %c4_i32_7 = arith.constant 4 : i32
    %16 = arith.cmpi sgt, %15, %c4_i32_7 : i32
    %17 = arith.extui %16 : i1 to i32
    %c0_i32_8 = arith.constant 0 : i32
    %18 = arith.cmpi ne, %17, %c0_i32_8 : i32
    scf.if %18 {
      %22 = tpu.iota {dimensions = array<i32: 1>} : vector<1x8xi32>
      %23 = vector.broadcast %10 : i32 to vector<1x8xi32>
      %24 = arith.addi %22, %23 : vector<1x8xi32>
      %c4_i32_11 = arith.constant 4 : i32
      %25 = vector.broadcast %c4_i32_11 : i32 to vector<1x8xi32>
      %26 = arith.cmpi slt, %24, %25 : vector<1x8xi32>
      %c0_12 = arith.constant 0 : index
      %c0_13 = arith.constant 0 : index
      %27 = vector.load %arg5[%c0_12, %c0_13] : memref<8x8xf32, #tpu.memory_space<vmem>>, vector<8x8xf32>
      %cst_14 = arith.constant 0.000000e+00 : f32
      %28 = vector.shape_cast %26 : vector<1x8xi1> to vector<1x8xi1>
      %29 = vector.broadcast %28 : vector<1x8xi1> to vector<8x8xi1>
      %30 = vector.broadcast %cst_14 : f32 to vector<8x8xf32>
      %31 = arith.select %29, %8, %30 : vector<8x8xi1>, vector<8x8xf32>
      %32 = arith.addf %27, %31 : vector<8x8xf32>
      %c0_15 = arith.constant 0 : index
      %c0_16 = arith.constant 0 : index
      %33 = vector.load %arg5[%c0_15, %c0_16] : memref<8x8xf32, #tpu.memory_space<vmem>>, vector<8x8xf32>
      tpu.vector_store %arg5[%c0_15, %c0_16], %32 {strides = array<i32>} : memref<8x8xf32, #tpu.memory_space<vmem>>, vector<8x8xf32>,
      %c0_17 = arith.constant 0 : index
      %c0_18 = arith.constant 0 : index
      %34 = vector.load %arg6[%c0_17, %c0_18] : memref<8x8xf32, #tpu.memory_space<vmem>>, vector<8x8xf32>
      %cst_19 = arith.constant 0.000000e+00 : f32
      %35 = vector.shape_cast %26 : vector<1x8xi1> to vector<1x8xi1>
      %36 = vector.broadcast %35 : vector<1x8xi1> to vector<8x8xi1>
      %37 = vector.broadcast %cst_19 : f32 to vector<8x8xf32>
      %38 = arith.select %36, %9, %37 : vector<8x8xi1>, vector<8x8xf32>
      %39 = arith.addf %34, %38 : vector<8x8xf32>
      %c0_20 = arith.constant 0 : index
      %c0_21 = arith.constant 0 : index
      %40 = vector.load %arg6[%c0_20, %c0_21] : memref<8x8xf32, #tpu.memory_space<vmem>>, vector<8x8xf32>
      tpu.vector_store %arg6[%c0_20, %c0_21], %39 {strides = array<i32>} : memref<8x8xf32, #tpu.memory_space<vmem>>, vector<8x8xf32>,
    } else {
    }
    %c0_i32_9 = arith.constant 0 : i32
    %19 = arith.cmpi eq, %arg0, %c0_i32_9 : i32
    %20 = arith.extui %19 : i1 to i32
    %c0_i32_10 = arith.constant 0 : i32
    %21 = arith.cmpi ne, %20, %c0_i32_10 : i32
    scf.if %21 {
      %c0_11 = arith.constant 0 : index
      %c0_12 = arith.constant 0 : index
      %22 = vector.load %arg5[%c0_11, %c0_12] : memref<8x8xf32, #tpu.memory_space<vmem>>, vector<8x8xf32>
      %cst_13 = arith.constant dense<0.000000e+00> : vector<8xf32>
      %23 = vector.multi_reduction <add>, %22, %cst_13 [1] : vector<8x8xf32> to vector<8xf32>
      %24 = vector.shape_cast %23 : vector<8xf32> to vector<8x1xf32>
      %c0_14 = arith.constant 0 : index
      %c0_15 = arith.constant 0 : index
      %25 = vector.load %arg3[%c0_14, %c0_15] : memref<8x1xf32, #tpu.memory_space<vmem>>, vector<8x1xf32>
      tpu.vector_store %arg3[%c0_14, %c0_15], %24 {strides = array<i32>} : memref<8x1xf32, #tpu.memory_space<vmem>>, vector<8x1xf32>,
      %c0_16 = arith.constant 0 : index
      %c0_17 = arith.constant 0 : index
      %26 = vector.load %arg6[%c0_16, %c0_17] : memref<8x8xf32, #tpu.memory_space<vmem>>, vector<8x8xf32>
      %cst_18 = arith.constant dense<0.000000e+00> : vector<8xf32>
      %27 = vector.multi_reduction <add>, %26, %cst_18 [1] : vector<8x8xf32> to vector<8xf32>
      %28 = vector.shape_cast %27 : vector<8xf32> to vector<8x1xf32>
      %c0_19 = arith.constant 0 : index
      %c0_20 = arith.constant 0 : index
      %29 = vector.load %arg4[%c0_19, %c0_20] : memref<8x1xf32, #tpu.memory_space<vmem>>, vector<8x1xf32>
      tpu.vector_store %arg4[%c0_19, %c0_20], %28 {strides = array<i32>} : memref<8x1xf32, #tpu.memory_space<vmem>>, vector<8x1xf32>,
    } else {
    }
    return
  }
  func.func @transform_0(%arg0: i32) -> (i32, i32) {
    %c0_i32 = arith.constant 0 : i32
    %c0_i32_0 = arith.constant 0 : i32
    return %arg0, %c0_i32 : i32, i32
  }
  func.func @transform_1(%arg0: i32) -> (i32, i32) {
    %c0_i32 = arith.constant 0 : i32
    %c0_i32_0 = arith.constant 0 : i32
    %c0_i32_1 = arith.constant 0 : i32
    return %c0_i32, %c0_i32_0 : i32, i32
  }
  func.func @transform_2(%arg0: i32) -> (i32, i32) {
    %c0_i32 = arith.constant 0 : i32
    %c0_i32_0 = arith.constant 0 : i32
    %c0_i32_1 = arith.constant 0 : i32
    return %c0_i32, %c0_i32_0 : i32, i32
  }
  func.func @transform_3(%arg0: i32) -> (i32, i32) {
    %c0_i32 = arith.constant 0 : i32
    %c0_i32_0 = arith.constant 0 : i32
    %c0_i32_1 = arith.constant 0 : i32
    return %c0_i32, %c0_i32_0 : i32, i32
  }
}

</mosaic_0001>

<bundles_post_ra>
// kernel: tpu_custom_call.1
= control target key start
LH: loop header
LB: loop body
LE: loop exit
PB: predicated region body
PF: predicated region fallthrough
CT: control target
= control target key end

     0   :  { %9 = vsyncpa [#allocation5], 0  ;;  %s620_s0 = inlined_call_operand.hbm [shape: f32[4,32], index: 0, kind: input, shape index: {}]   ;;  %s621_s1 = inlined_call_operand.hbm [shape: f32[32,128], index: 1, kind: input, shape index: {}]   ;;  %s622_s2 = inlined_call_operand.vmem [shape: f32[8,1], index: 2, kind: output, shape index: {0}]   ;;  %s623_s3 = inlined_call_operand.vmem [shape: f32[8,1], index: 3, kind: output, shape index: {1}]  }
   0x1   :  { %10 = vsyncpa [#allocation7], 0 }
   0x2   :  { %15 = vsyncadd [#allocation5], 64  ;;  %s526_s12 = smov [#allocation4]   ;;  %s478_s16 = scalar_lea.hbm %s620_s0, 64 }
   0x3   :  { %s16_s13 = sshll.u32 %s526_s12, 4  ;;  %p479_p0 = scmp.ne.s32.totalorder %s620_s0, %s478_s16  ;;  %s17_s13 = int_to_ptr.vmem [resolvable:$true] %s16_s13 }
   0x4   :  { %p482_p1 = scmp.lt.u32.totalorder %s478_s16, %s620_s0 }
   0x6   :  { %p484_p2 = pnand %p482_p1, %p479_p0 }
   0x8   :  { %487 = shalt.err (!%p484_p2)
}
   0x9   :  { %s488_s21 = scalar_lea.vmem %s17_s13, 64  ;;  %s492_s22 = scalar_lea.vmem %s17_s13, 128 }
   0xa   :  { %p489_p3 = scmp.ne.s32.totalorder %s17_s13, %s488_s21  ;;  %p493_p4 = scmp.lt.s32.totalorder %s17_s13, %s17_s13 }
   0xb   :  { %p494_p5 = scmp.lt.s32.totalorder %s492_s22, %s488_s21 }
   0xd   :  { %p495_p6 = por %p494_p5, %p493_p4 }
   0xf   :  { %p496_p7 = pnand %p495_p6, %p489_p3 }
  0x11   :  { %499 = shalt.err (!%p496_p7)
}
  0x12   :  { %s527_s23 = smov 64   ;;  %s528_s24 = smov 4  }
  0x13   :  { %22 = dma.hbm_to_vmem [thread:$0]  %s620_s0, 64, %s17_s13, [#allocation5], %s527_s23, %s527_s23, %s528_s24  }
  0x14   :  { %s529_s27 = smov [#allocation6]   ;;  %s500_s4 = scalar_lea.hbm %s621_s1, 512 }
  0x15   :  { %s28_s28 = sshll.u32 %s529_s27, 4  ;;  %p501_p8 = scmp.ne.s32.totalorder %s621_s1, %s500_s4  ;;  %s29_s28 = int_to_ptr.vmem [resolvable:$true] %s28_s28 }
  0x16   :  { %p504_p9 = scmp.lt.u32.totalorder %s500_s4, %s621_s1 }
  0x18   :  { %p506_p10 = pnand %p504_p9, %p501_p8 }
  0x1a   :  { %509 = shalt.err (!%p506_p10)
}
  0x1b   :  { %s510_s9 = scalar_lea.vmem %s29_s28, 512  ;;  %p515_p12 = scmp.lt.s32.totalorder %s29_s28, %s29_s28 }
  0x1c   :  { %p511_p11 = scmp.ne.s32.totalorder %s29_s28, %s510_s9  ;;  %p516_p13 = scmp.lt.s32.totalorder %s510_s9, %s510_s9 }
  0x1e   :  { %p517_p0 = por %p516_p13, %p515_p12 }
  0x20   :  { %p518_p1 = pnand %p517_p0, %p511_p11 }
  0x22   :  { %521 = shalt.err (!%p518_p1)
}
  0x23   :  { %s530_s0 = smov 128   ;;  %s531_s10 = smov 8  }
  0x24   :  { %34 = dma.hbm_to_vmem [thread:$0]  %s621_s1, 512, %s29_s28, [#allocation7], %s530_s0, %s530_s0, %s531_s10  }
  0x25   :  { %522 = dma.done.wait [#allocation5], 128  }
  0x26   :  { %523 = vsyncadd [#allocation5], 4294967168 }
  0x27   :  { %524 = dma.done.wait [#allocation7], 512  }
  0x28   :  { %525 = vsyncadd [#allocation7], 4294966784  ;;  %vm45_vm0 = vcmask 64512   ;;  %v532_v0 = vmov 0.0|0.0   ;;  %v533_v1 = vmov 0.0   ;;  %vm534_vm1 = vmmov 0  }
  0x29   :  { %449 = vmatprep.subr.bf16.mxu0 %v532_v0  ;;  %46 = vst.msk [vmem:[#allocation2] sm:$0xff] %vm45_vm0, %v533_v1  ;;  %47 = vst.msk [vmem:[#allocation3] sm:$0xff] %vm45_vm0, %v533_v1  ;;  %446 = vmatprep.mubr.msk.f32.mxu0 %vm534_vm1, %v533_v1  ;;  %v49_v2 = vld [vmem:[#allocation6] sm:$0xff]  ;;  %v50_v3 = vld [vmem:[#allocation6 + $0x8] sm:$0xff]  ;;  %vm53_vm2 = vcmask 261120  }
  0x2a   :  { %v51_v4 = vld [vmem:[#allocation6 + $0x10] sm:$0xff]  ;;  %v450_v5 = vpack.c.bf16 %v50_v3, %v49_v2  ;;  %v52_v6 = vld [vmem:[#allocation6 + $0x18] sm:$0xff]  ;;  %v535_v22 = vmov 683565275   ;;  %v536_v24 = vmov 2475754826  }
  0x2b   :  { %v453_v7 = vpack.c.bf16 %v52_v6, %v51_v4  ;;  %v48_v8 = vld [vmem:[#allocation4] sm:$0xff]  ;;  %v537_v27 = vmov 2131351028   ;;  %v538_v30 = vmov 2102212464  }
  0x2c   :  { %451 = vmatpush3.bf16.msra.mxu0 %v450_v5  ;;  %v539_v33 = vmov 920167782   ;;  %v540_v36 = vmov 1326507024  }
  0x2d   :  { %452 = vmatprep.subr.bf16.mxu0 %v532_v0 }
  0x30   :  { %454 = vmatpush3.bf16.msra.mxu0 %v453_v7 }
  0x33   :  { %447 = vmatmul.mubr.msk.f32.vlgmr.msra.gmra.mrb[0].mxu0 %vm53_vm2, %v48_v8 }
 0x106   :  { %v123_v9 = vpop.f32.mrb[0].mxu0 }
 0x107   :  { %127 = vxpose.xlu0.b32.start.end [1/1] (short) (narrow) %v123_v9, 8  ;;  %v448_v10 = vpop.f32.mrb[1].mxu0 }
 0x187   :  { %v587_v11 = vpop.trf.xlu0 }
 0x188   :  { %v162_v12 = vand.u32 2139095040, %v587_v11  ;;  %v159_v16 = vand.u32 2147483647, %v587_v11  ;;  %vm161_vm10 = vcmp.lt.s32.totalorder %v587_v11, 0 }
 0x18a   :  { %v163_v13 = vshrl.u32 %v162_v12, 23  ;;  %v166_v19 = vand.u32 8388607, %v159_v16  ;;  %vm160_vm11 = vcmp.le.f32.partialorder %v159_v16, 0.7853982 }
 0x18c   :  { %v425_v14 = vadd.s32 4294967169, %v163_v13  ;;  %v167_v38 = vor.u32 8388608, %v166_v19 }
 0x18e   :  { %v169_v15 = vadd.s32 1, %v425_v14  ;;  %v207_v52 = vshll.u32 %v167_v38, 8 }
 0x190   :  { %vm170_vm3 = vcmp.gt.s32.totalorder %v169_v15, 0 }
 0x191   :  { %v171_v17 = vsel %vm170_vm3, %v169_v15, 0 }
 0x192   :  { %v173_v18 = vand.u32 31, %v171_v17  ;;  %v172_v21 = vshrl.u32 %v171_v17, 5 }
 0x194   :  { %v174_v20 = vsub.s32 32, %v173_v18  ;;  %v176_v23 = vshll.u32 %v535_v22, %v173_v18  ;;  %v179_v25 = vshll.u32 %v536_v24, %v173_v18  ;;  %v182_v29 = vshll.u32 %v537_v27, %v173_v18 }
 0x195   :  { %v185_v32 = vshll.u32 %v538_v30, %v173_v18  ;;  %v188_v35 = vshll.u32 %v539_v33, %v173_v18  ;;  %vm191_vm4 = vcmp.lt.s32.totalorder %v172_v21, 1  ;;  %vm194_vm5 = vcmp.lt.s32.totalorder %v172_v21, 4 }
 0x196   :  { %v177_v26 = vshrl.u32 %v536_v24, %v174_v20  ;;  %v180_v28 = vshrl.u32 %v537_v27, %v174_v20  ;;  %v183_v31 = vshrl.u32 %v538_v30, %v174_v20  ;;  %v186_v34 = vshrl.u32 %v539_v33, %v174_v20 }
 0x197   :  { %v189_v37 = vshrl.u32 %v540_v36, %v174_v20  ;;  %v175_v47 = vshrl.u32 %v535_v22, %v174_v20  ;;  %vm193_vm6 = vcmp.lt.s32.totalorder %v172_v21, 3  ;;  %vm192_vm7 = vcmp.lt.s32.totalorder %v172_v21, 2 }
 0x198   :  { %v178_v39 = vor.u32 %v177_v26, %v176_v23  ;;  %v181_v40 = vor.u32 %v180_v28, %v179_v25  ;;  %v184_v41 = vor.u32 %v183_v31, %v182_v29  ;;  %v187_v42 = vor.u32 %v186_v34, %v185_v32 }
 0x199   :  { %v190_v43 = vor.u32 %v189_v37, %v188_v35  ;;  %v383_v31 = vlaneseq }
 0x19a   :  { %v196_v44 = vsel %vm194_vm5, %v184_v41, 2102212464  ;;  %v199_v45 = vsel %vm191_vm4, %v178_v39, %v181_v40  ;;  %v203_v46 = vsel %vm191_vm4, %v181_v40, %v184_v41  ;;  %v200_v48 = vsel %vm194_vm5, %v187_v42, 920167782 }
 0x19b   :  { %v204_v49 = vsel %vm194_vm5, %v190_v43, 1326507024  ;;  %v201_v50 = vsel %vm193_vm6, %v184_v41, %v200_v48  ;;  %v195_v53 = vsel %vm191_vm4, %v175_v47, %v178_v39  ;;  %v197_v54 = vsel %vm193_vm6, %v181_v40, %v196_v44 }
 0x19c   :  { %v205_v51 = vsel %vm193_vm6, %v187_v42, %v204_v49  ;;  %v202_v55 = vsel %vm192_vm7, %v199_v45, %v201_v50  ;;  %v198_v61 = vsel %vm192_vm7, %v195_v53, %v197_v54  ;;  %v384_v33 = vand.u32 127, %v383_v31  ;;  %v388_v45 = vld [vmem:[#allocation2] sm:$0xff] }
 0x19d   :  { %v206_v56 = vsel %vm192_vm7, %v203_v46, %v205_v51  ;;  %v596_v59 = vmul.u32.u64.low %v207_v52, %v202_v55  ;;  %v597_v60 = vmul.u32.u64.high %v207_v52, %v202_v55, %v596_v59  ;;  %v214_v63 = vmul.u32 %v207_v52, %v198_v61  ;;  %v395_v46 = vld [vmem:[#allocation3] sm:$0xff] }
 0x19e   :  { %v593_v57 = vmul.u32.u64.low %v207_v52, %v206_v56  ;;  %v594_v58 = vmul.u32.u64.high %v207_v52, %v206_v56, %v593_v57  ;;  %vm387_vm12 = vcmp.lt.s32.totalorder %v384_v33, 4  ;;  %vm251_vm4 = vweird.f32 %v587_v11 }
 0x19f   :  { %v217_v62 = vadd.s32 1, %v597_v60  ;;  %vm407_vm5 = vcmask 7168  }
 0x1a0   :  { %vm216_vm8 = vc.u32 %v594_v58, %v596_v59  ;;  %v215_v12 = vadd.s32 %v596_v59, %v594_v58 }
 0x1a1   :  { %v218_v0 = vsel %vm216_vm8, %v217_v62, %v597_v60 }
 0x1a2   :  { %v219_v1 = vadd.s32 %v218_v0, %v214_v63 }
 0x1a4   :  { %v220_v2 = vadd.s32 536870912, %v219_v1 }
 0x1a6   :  { %v221_v3 = vshrl.u32 %v220_v2, 30 }
 0x1a8   :  { %v222_v4 = vshll.u32 %v221_v3, 30  ;;  %v245_v25 = vsub.s32 4, %v221_v3 }
 0x1aa   :  { %v223_v5 = vsub.s32 %v219_v1, %v222_v4  ;;  %v246_v28 = vsel %vm161_vm10, %v245_v25, %v221_v3 }
 0x1ab   :  { %v248_v30 = vsel %vm160_vm11, 0, %v246_v28 }
 0x1ac   :  { %v225_v6 = vsub.s32 0, %v223_v5  ;;  %v355_v32 = vadd.s32 3, %v248_v30  ;;  %v252_v34 = vand.u32 3, %v248_v30 }
 0x1ae   :  { %v426_v7 = vmin.u32 %v225_v6, %v223_v5  ;;  %v356_v35 = vand.u32 3, %v355_v32  ;;  %vm257_vm13 = vcmp.eq.s32.totalorder %v252_v34, 2  ;;  %vm254_vm15 = vcmp.eq.s32.totalorder %v252_v34, 0 }
 0x1af   :  { %vm253_vm2 = vcmp.lt.s32.totalorder %v252_v34, 2 }
 0x1b0   :  { %v227_v8 = vclz %v426_v7  ;;  %vm361_vm14 = vcmp.eq.s32.totalorder %v356_v35, 2  ;;  %vm358_vm1 = vcmp.eq.s32.totalorder %v356_v35, 0  ;;  %vm357_vm3 = vcmp.lt.s32.totalorder %v356_v35, 2 }
 0x1b2   :  { %v427_v9 = vadd.s32 4294967294, %v227_v8 }
 0x1b4   :  { %vm428_vm9 = vcmp.lt.s32.totalorder %v427_v9, 0 }
 0x1b5   :  { %v230_v10 = vsel %vm428_vm9, 0, %v427_v9 }
 0x1b6   :  { %v231_v13 = vsub.s32 32, %v230_v10  ;;  %v235_v14 = vsub.s32 4294967266, %v230_v10  ;;  %v232_v15 = vshll.u32 %v223_v5, %v230_v10 }
 0x1b8   :  { %v233_v17 = vshrl.u32 %v215_v12, %v231_v13  ;;  %v236_v18 = vadd.s32 127, %v235_v14 }
 0x1ba   :  { %v234_v19 = vor.u32 %v233_v17, %v232_v15  ;;  %v237_v20 = vshll.u32 %v236_v18, 23 }
 0x1bc   :  { %v238_v21 = vor.u32 4788187, %v237_v20  ;;  %v241_v23 = vcvt.s32.f32 %v234_v19 }
 0x1be   :  { %v239_v22 = vand.u32 2147483647, %v238_v21 }
 0x1c0   :  { %v242_v24 = vmul.f32 %v241_v23, %v239_v22 }
 0x1c2   :  { %v243_v26 = vxor.u32 2147483648, %v242_v24 }
 0x1c4   :  { %v244_v27 = vsel %vm161_vm10, %v243_v26, %v242_v24 }
 0x1c5   :  { %v247_v29 = vsel %vm160_vm11, %v587_v11, %v244_v27 }
 0x1c6   :  { %474 = vcosq.f32 %v247_v29 }
 0x1c7   :  { %476 = vsinq.f32 %v247_v29 }
 0x1d0   :  { %v475_v36 = vpop.eup %474 }
 0x1d1   :  { %v477_v37 = vpop.eup %476  ;;  %v258_v38 = vxor.u32 2147483648, %v475_v36 }
 0x1d2   :  { %v255_v39 = vxor.u32 2147483648, %v477_v37 }
 0x1d3   :  { %v259_v16 = vsel %vm257_vm13, %v258_v38, %v477_v37  ;;  %v363_v40 = vsel %vm361_vm14, %v258_v38, %v477_v37 }
 0x1d4   :  { %v256_v41 = vsel %vm254_vm15, %v475_v36, %v255_v39  ;;  %v360_v42 = vsel %vm358_vm1, %v475_v36, %v255_v39 }
 0x1d5   :  { %v260_v43 = vsel %vm253_vm2, %v256_v41, %v259_v16  ;;  %v364_v44 = vsel %vm357_vm3, %v360_v42, %v363_v40 }
 0x1d6   :  { %v261_v47 = vsel %vm251_vm4, nan, %v260_v43  ;;  %v365_v48 = vsel %vm251_vm4, nan, %v364_v44 }
 0x1d7   :  { %v391_v49 = vsel %vm387_vm12, %v261_v47, 0.0  ;;  %v396_v50 = vsel %vm387_vm12, %v365_v48, 0.0 }
 0x1d8   :  { %v392_v51 = vadd.f32 %v391_v49, %v388_v45  ;;  %v397_v52 = vadd.f32 %v396_v50, %v395_v46 }
 0x1da   :  { %394 = vst.msk [vmem:[#allocation2] sm:$0xff] %vm45_vm0, %v392_v51  ;;  %398 = vst.msk [vmem:[#allocation3] sm:$0xff] %vm45_vm0, %v397_v52 }
 0x1e1   :  { %v409_v53 = vld [vmem:[#allocation3] sm:$0xff]  ;;  %v402_v54 = vld [vmem:[#allocation2] sm:$0xff] }
 0x1e2   :  { %v410_v11 = vsel %vm45_vm0, %v409_v53, 0.0  ;;  %v404_v55 = vsel %vm45_vm0, %v402_v54, 0.0 }
 0x1e3   :  { %411 = vadd.xlane.f32.xlu1 %v410_v11  ;;  %405 = vadd.xlane.f32.xlu0 %v404_v55 }
 0x270   :  { %v412_v56 = vpop.xlane.xlu1 %411  ;;  %v406_v57 = vpop.xlane.xlu0 %405 }
 0x271   :  { %413 = vst.msk [vmem:[%s623_s3] sm:$0xff] %vm407_vm5, %v412_v56  ;;  %408 = vst.msk [vmem:[%s622_s2] sm:$0xff] %vm407_vm5, %v406_v57 }
 0x272   :  { %422 = vsyncpa [#allocation5], 1 }
 0x273   :  { %423 = vsyncpa [#allocation7], 1 }

</bundles_post_ra>
